<compile_context>
chip_gen: v7x
topology: tpu7x:2x2x1
jax: 0.10.0
libtpu: 0.0.40
codegen_flags: <defaults>
</compile_context>

<pallas_src>
import jax
import jax.numpy as jnp
from jax.experimental import pallas as pl
from jax.experimental.pallas import tpu as pltpu


def _round_up(x, m):
    return ((x + m - 1) // m) * m


def _softsign(x):
    # Exact reciprocal: approx=True's ~2^-12 relative error could exceed the
    # 1e-4 tolerance check on softsign, and the kernel is not compute-bound.
    return x * pl.reciprocal(1.0 + jnp.abs(x), approx=False)


def sw_rcs_kernel(x_ref, w1_ref, b1_ref, w2_ref, b2_ref, w3_ref, b3_ref, o_ref):
    # Entire 3-layer MLP fused; one invocation per batch tile.
    x = x_ref[...].astype(jnp.float32)

    h1 = jnp.dot(x, w1_ref[...], preferred_element_type=jnp.float32) + b1_ref[...]
    h1 = _softsign(h1)

    h2 = jnp.dot(h1, w2_ref[...], preferred_element_type=jnp.float32) + b2_ref[...]
    h2 = _softsign(h2)

    out = jnp.dot(h2, w3_ref[...], preferred_element_type=jnp.float32) + b3_ref[...]
    o_ref[...] = out.astype(o_ref.dtype)


def sw_rcs_forward(x, params, *, batch_tile=4096):
    """x: (B, input_size) float32. Returns (B, 224) float32."""
    w1, b1, w2, b2, w3, b3 = params
    B, d_in = x.shape
    d_h = w1.shape[1]        # 16
    d_out = w3.shape[1]      # 224

    # --- Batch tiling: no padding of x or the output -------------------------
    # bt is a multiple of 8 (sublane alignment); last block may be ragged and is
    # masked by Pallas. Prefer >= 2 grid steps so v7x can shard across its 2 TCs.
    bt = min(_round_up(batch_tile, 8), _round_up(B, 8))
    if B > 8 and pl.cdiv(B, bt) < 2:
        bt = _round_up(pl.cdiv(B, 2), 8)
    grid = (pl.cdiv(B, bt),)

    # Weights/biases are <20 KiB total: constant block index keeps them
    # VMEM-resident across the whole grid.
    def full(shape):
        return pl.BlockSpec(shape, lambda i: (0,) * len(shape))

    flops = 2 * B * (d_in * d_h + d_h * d_h + d_h * d_out)
    weight_bytes = 4 * (d_in * d_h + d_h + d_h * d_h + d_h + d_h * d_out + d_out)
    bytes_accessed = B * (d_in + d_out) * 4 + weight_bytes
    cost = pl.CostEstimate(flops=flops, transcendentals=0,
                           bytes_accessed=bytes_accessed)

    out = pl.pallas_call(
        sw_rcs_kernel,
        out_shape=jax.ShapeDtypeStruct((B, d_out), x.dtype),
        grid_spec=pltpu.PrefetchScalarGridSpec(
            num_scalar_prefetch=0,
            grid=grid,
            in_specs=[
                pl.BlockSpec((bt, d_in), lambda i: (i, 0)),   # x tile (7 = full extent)
                full((d_in, d_h)),                            # W1
                full((1, d_h)),                               # b1
                full((d_h, d_h)),                             # W2
                full((1, d_h)),                               # b2
                full((d_h, d_out)),                           # W3
                full((1, d_out)),                             # b3
            ],
            out_specs=pl.BlockSpec((bt, d_out), lambda i: (i, 0)),
        ),
        compiler_params=pltpu.CompilerParams(
            dimension_semantics=("parallel",),
        ),
        cost_estimate=cost,
    )(x, w1, b1, w2, b2, w3, b3)

    return out


def init_params(key, input_size):
    """Deterministic init matching nn.Linear shapes (stored as (in, out))."""
    def linear_init(k, fan_in, fan_out):
        kw, kb = jax.random.split(k)
        bound = 1.0 / jnp.sqrt(jnp.float32(fan_in))
        w = jax.random.uniform(kw, (fan_in, fan_out), jnp.float32, -bound, bound)
        b = jax.random.uniform(kb, (1, fan_out), jnp.float32, -bound, bound)
        return w, b

    k1, k2, k3 = jax.random.split(key, 3)
    w1, b1 = linear_init(k1, input_size, 16)
    w2, b2 = linear_init(k2, 16, 16)
    w3, b3 = linear_init(k3, 16, 224)
    return (w1, b1, w2, b2, w3, b3)


def reference_forward(x, params):
    w1, b1, w2, b2, w3, b3 = params
    h1 = x @ w1 + b1
    h1 = h1 / (1.0 + jnp.abs(h1))
    h2 = h1 @ w2 + b2
    h2 = h2 / (1.0 + jnp.abs(h2))
    return h2 @ w3 + b3


if __name__ == "__main__":
    key = jax.random.PRNGKey(0)
    k_x, k_p = jax.random.split(key)

    input_size = 7          # Temp, Pres, gaseous concentrations (SW)
    batch = 20              # not a multiple of 8: exercises the ragged last block

    x = jax.random.normal(k_x, (batch, input_size), jnp.float32)
    params = init_params(k_p, input_size)

    out = sw_rcs_forward(x, params)   # splits into 2 grid steps (16 + ragged 4)
    out = jax.block_until_ready(out)

    ref = reference_forward(x, params)
    assert out.shape == (batch, 224)
    assert jnp.allclose(out, ref, atol=1e-4, rtol=1e-4)

    print("KERNEL_OK")
</pallas_src>

<mosaic_0001>
module attributes {stable_mosaic.version = 11 : i64} {
  func.func @sw_rcs_kernel(%arg0: i32, %arg1: memref<16x7xf32, #tpu.memory_space<vmem>>, %arg2: memref<7x16xf32, #tpu.memory_space<vmem>>, %arg3: memref<1x16xf32, #tpu.memory_space<vmem>>, %arg4: memref<16x16xf32, #tpu.memory_space<vmem>>, %arg5: memref<1x16xf32, #tpu.memory_space<vmem>>, %arg6: memref<16x224xf32, #tpu.memory_space<vmem>>, %arg7: memref<1x224xf32, #tpu.memory_space<vmem>>, %arg8: memref<16x224xf32, #tpu.memory_space<vmem>>) attributes {dimension_semantics = [#tpu.dimension_semantics<parallel>], iteration_bounds = array<i64: 2>, scalar_prefetch = 0 : i64, scratch_operands = 0 : i64, tpu.core_type = #tpu.core_type<tc>, window_params = [{transform_indices = @transform_0, window_bounds = array<i64: 16, 7>}, {pipeline_mode = #tpu.pipeline_mode<synchronous>, transform_indices = @transform_1, window_bounds = array<i64: 7, 16>}, {pipeline_mode = #tpu.pipeline_mode<synchronous>, transform_indices = @transform_2, window_bounds = array<i64: 1, 16>}, {pipeline_mode = #tpu.pipeline_mode<synchronous>, transform_indices = @transform_3, window_bounds = array<i64: 16, 16>}, {pipeline_mode = #tpu.pipeline_mode<synchronous>, transform_indices = @transform_4, window_bounds = array<i64: 1, 16>}, {pipeline_mode = #tpu.pipeline_mode<synchronous>, transform_indices = @transform_5, window_bounds = array<i64: 16, 224>}, {pipeline_mode = #tpu.pipeline_mode<synchronous>, transform_indices = @transform_6, window_bounds = array<i64: 1, 224>}, {transform_indices = @transform_7, window_bounds = array<i64: 16, 224>}]} {
    %c0 = arith.constant 0 : index
    %c0_0 = arith.constant 0 : index
    %0 = vector.load %arg1[%c0, %c0_0] : memref<16x7xf32, #tpu.memory_space<vmem>>, vector<16x7xf32>
    %c0_1 = arith.constant 0 : index
    %c0_2 = arith.constant 0 : index
    %1 = vector.load %arg2[%c0_1, %c0_2] : memref<7x16xf32, #tpu.memory_space<vmem>>, vector<7x16xf32>
    %cst = arith.constant dense<0.000000e+00> : vector<16x16xf32>
    %2 = tpu.matmul %0, %1, %cst {dimension_numbers = #tpu.dot_dimension_numbers<[1], [0], [0], [1], [0, 0, 1, 1], [], []>} : vector<16x7xf32>, vector<7x16xf32>, vector<16x16xf32> -> vector<16x16xf32>
    %c0_3 = arith.constant 0 : index
    %c0_4 = arith.constant 0 : index
    %3 = vector.load %arg3[%c0_3, %c0_4] : memref<1x16xf32, #tpu.memory_space<vmem>>, vector<1x16xf32>
    %4 = vector.broadcast %3 : vector<1x16xf32> to vector<16x16xf32>
    %5 = arith.addf %2, %4 : vector<16x16xf32>
    %6 = math.absf %5 : vector<16x16xf32>
    %cst_5 = arith.constant 1.000000e+00 : f32
    %7 = vector.broadcast %cst_5 : f32 to vector<16x16xf32>
    %8 = arith.addf %7, %6 : vector<16x16xf32>
    %9 = tpu.reciprocal %8 : vector<16x16xf32> -> vector<16x16xf32>
    %10 = arith.mulf %5, %9 : vector<16x16xf32>
    %c0_6 = arith.constant 0 : index
    %c0_7 = arith.constant 0 : index
    %11 = vector.load %arg4[%c0_6, %c0_7] : memref<16x16xf32, #tpu.memory_space<vmem>>, vector<16x16xf32>
    %cst_8 = arith.constant dense<0.000000e+00> : vector<16x16xf32>
    %12 = tpu.matmul %10, %11, %cst_8 {dimension_numbers = #tpu.dot_dimension_numbers<[1], [0], [0], [1], [0, 0, 1, 1], [], []>} : vector<16x16xf32>, vector<16x16xf32>, vector<16x16xf32> -> vector<16x16xf32>
    %c0_9 = arith.constant 0 : index
    %c0_10 = arith.constant 0 : index
    %13 = vector.load %arg5[%c0_9, %c0_10] : memref<1x16xf32, #tpu.memory_space<vmem>>, vector<1x16xf32>
    %14 = vector.broadcast %13 : vector<1x16xf32> to vector<16x16xf32>
    %15 = arith.addf %12, %14 : vector<16x16xf32>
    %16 = math.absf %15 : vector<16x16xf32>
    %cst_11 = arith.constant 1.000000e+00 : f32
    %17 = vector.broadcast %cst_11 : f32 to vector<16x16xf32>
    %18 = arith.addf %17, %16 : vector<16x16xf32>
    %19 = tpu.reciprocal %18 : vector<16x16xf32> -> vector<16x16xf32>
    %20 = arith.mulf %15, %19 : vector<16x16xf32>
    %c0_12 = arith.constant 0 : index
    %c0_13 = arith.constant 0 : index
    %21 = vector.load %arg6[%c0_12, %c0_13] : memref<16x224xf32, #tpu.memory_space<vmem>>, vector<16x224xf32>
    %cst_14 = arith.constant dense<0.000000e+00> : vector<16x224xf32>
    %22 = tpu.matmul %20, %21, %cst_14 {dimension_numbers = #tpu.dot_dimension_numbers<[1], [0], [0], [1], [0, 0, 1, 1], [], []>} : vector<16x16xf32>, vector<16x224xf32>, vector<16x224xf32> -> vector<16x224xf32>
    %c0_15 = arith.constant 0 : index
    %c0_16 = arith.constant 0 : index
    %23 = vector.load %arg7[%c0_15, %c0_16] : memref<1x224xf32, #tpu.memory_space<vmem>>, vector<1x224xf32>
    %24 = vector.broadcast %23 : vector<1x224xf32> to vector<16x224xf32>
    %25 = arith.addf %22, %24 : vector<16x224xf32>
    %c0_17 = arith.constant 0 : index
    %c0_18 = arith.constant 0 : index
    %26 = vector.load %arg8[%c0_17, %c0_18] : memref<16x224xf32, #tpu.memory_space<vmem>>, vector<16x224xf32>
    tpu.vector_store %arg8[%c0_17, %c0_18], %25 {strides = array<i32>} : memref<16x224xf32, #tpu.memory_space<vmem>>, vector<16x224xf32>,
    return
  }
  func.func @transform_0(%arg0: i32) -> (i32, i32) {
    %c0_i32 = arith.constant 0 : i32
    %c0_i32_0 = arith.constant 0 : i32
    return %arg0, %c0_i32 : i32, i32
  }
  func.func @transform_1(%arg0: i32) -> (i32, i32) {
    %c0_i32 = arith.constant 0 : i32
    %c0_i32_0 = arith.constant 0 : i32
    %c0_i32_1 = arith.constant 0 : i32
    return %c0_i32, %c0_i32_0 : i32, i32
  }
  func.func @transform_2(%arg0: i32) -> (i32, i32) {
    %c0_i32 = arith.constant 0 : i32
    %c0_i32_0 = arith.constant 0 : i32
    %c0_i32_1 = arith.constant 0 : i32
    return %c0_i32, %c0_i32_0 : i32, i32
  }
  func.func @transform_3(%arg0: i32) -> (i32, i32) {
    %c0_i32 = arith.constant 0 : i32
    %c0_i32_0 = arith.constant 0 : i32
    %c0_i32_1 = arith.constant 0 : i32
    return %c0_i32, %c0_i32_0 : i32, i32
  }
  func.func @transform_4(%arg0: i32) -> (i32, i32) {
    %c0_i32 = arith.constant 0 : i32
    %c0_i32_0 = arith.constant 0 : i32
    %c0_i32_1 = arith.constant 0 : i32
    return %c0_i32, %c0_i32_0 : i32, i32
  }
  func.func @transform_5(%arg0: i32) -> (i32, i32) {
    %c0_i32 = arith.constant 0 : i32
    %c0_i32_0 = arith.constant 0 : i32
    %c0_i32_1 = arith.constant 0 : i32
    return %c0_i32, %c0_i32_0 : i32, i32
  }
  func.func @transform_6(%arg0: i32) -> (i32, i32) {
    %c0_i32 = arith.constant 0 : i32
    %c0_i32_0 = arith.constant 0 : i32
    %c0_i32_1 = arith.constant 0 : i32
    return %c0_i32, %c0_i32_0 : i32, i32
  }
  func.func @transform_7(%arg0: i32) -> (i32, i32) {
    %c0_i32 = arith.constant 0 : i32
    %c0_i32_0 = arith.constant 0 : i32
    return %arg0, %c0_i32 : i32, i32
  }
}

</mosaic_0001>

<bundles_post_ra>
// kernel: tpu_custom_call.1
= control target key start
LH: loop header
LB: loop body
LE: loop exit
PB: predicated region body
PF: predicated region fallthrough
CT: control target
= control target key end

     0   :  { %12 = vsyncpa [#allocation3], 0  ;;  %s1351_s0 = inlined_call_operand.vmem [shape: f32[20,7], index: 0, kind: input, shape index: {}]   ;;  %s1352_s1 = inlined_call_operand.hbm [shape: f32[7,16], index: 1, kind: input, shape index: {}]   ;;  %s1353_s2 = inlined_call_operand.hbm [shape: f32[1,16], index: 2, kind: input, shape index: {}]   ;;  %s1354_s3 = inlined_call_operand.vmem [shape: f32[16,16], index: 3, kind: input, shape index: {}]   ;;  %s1355_s4 = inlined_call_operand.hbm [shape: f32[1,16], index: 4, kind: input, shape index: {}]   ;;  %s1356_s5 = inlined_call_operand.vmem [shape: f32[16,224], index: 5, kind: input, shape index: {}]   ;;  %s1357_s6 = inlined_call_operand.vmem [shape: f32[1,224], index: 6, kind: input, shape index: {}]   ;;  %s1358_s7 = inlined_call_operand.hbm [shape: f32[20,224], index: 7, kind: output, shape index: {}]  }
   0x1   :  { %13 = vsyncpa [#allocation6], 0 }
   0x2   :  { %14 = vsyncpa [#allocation4], 0 }
   0x3   :  { %16 = vsyncpa [#allocation4 + $0x1], 0  ;;  %s1111_s24 = smov 0   ;;  %s1113_s25 = smov 0  }
   0x4   :  { %s1115_s26 = smov 0   ;;  %s1117_s27 = smov 0  }
   0x5 LB: > { %s1132_s28 = sadd.s32 4294967295, %s1062_s27   ;;  %s765_s29 = sadd.s32 4294967294, %s1062_s27   ;;  %s1062_s27 = sphi %s1117_s27, %s1378_s27   ;;  %s1058_s26 = sphi %s1115_s26, %s1377_s26   ;;  %s1054_s25 = sphi %s1113_s25, %s1376_s25   ;;  %s1050_s24 = sphi %s1111_s24, %s1375_s24  }
   0x6   : > { %s1136_s30 = sadd.s32 1, %s1062_s27   ;;  %s181_s8 = sadd.s32 1, %s1058_s26 }
   0x7   : > { %s178_s9 = ssub.s32 %s1062_s27, %s1136_s30  ;;  %p191_p0 = scmp.ne.s32.totalorder %s1058_s26, %s1054_s25 }
   0x8   : > { %p179_p1 = scmp.eq.s32.totalorder %s178_s9, 0  ;;  %p192_p2 = scmp.eq.s32.totalorder %s1132_s28, 1 }
   0x9   : > { %p197_p3 = scmp.ne.s32.totalorder %s1054_s25, %s1050_s24  ;;  %p198_p4 = scmp.eq.s32.totalorder %s765_s29, 1 }
   0xa   : > { %s1147_s10 = scalar_select %p179_p1, %s1058_s26, %s181_s8  }
   0xb   : > { %p1149_p5 = por %p192_p2, %p191_p0  ;;  %p1153_p6 = por %p198_p4, %p197_p3 }
   0xc   : > { %1361 = sst [smem:[#allocation12_spill]] %s1147_s10  ;;  %p766_p7 = scmp.ge.s32.totalorder %s1062_s27, 1 }
   0xd   : > { %s1362_s11 = scalar_select %p1149_p5, 1, 0 }
   0xe   : > { %s1363_s12 = scalar_select %p1153_p6, 1, 0 }
   0xf   : > { %p205_p8 = scmp.lt.s32.totalorder %s1062_s27, 3  ;;  %p1359_p9 = scmp.eq.s32.totalorder %s1132_s28, 0 }
  0x10   : > { %s1064_s14 = smov [#allocation5]   ;;  %s1065_s16 = smov [#allocation2]  }
  0x11   : > { %p1160_p10 = pnand %p766_p7, %p205_p8  ;;  %s229_s15 = sshll.u32 %s1064_s14, 4  ;;  %s230_s15 = int_to_ptr.vmem [resolvable:$true] %s229_s15 }
  0x12   : > { %s218_s17 = sshll.u32 %s1065_s16, 4  ;;  %s1066_s19 = smov [#allocation7]   ;;  %s1172_s17 = int_to_ptr.vmem [resolvable:$true] %s218_s17 }
  0x13   : > { %s1364_s13 = scalar_select %p1160_p10, 1, 0 }
  0x14   : > { %p841_p11 = pneg %p1160_p10  ;;  %s243_s20 = sshll.u32 %s1066_s19, 4  ;;  %s1174_s20 = int_to_ptr.vmem [resolvable:$true] %s243_s20 }
  0x15   : > { %s908_s23 = scalar_lea.hbm %s1353_s2, 16 }
  0x16   : > { %p1168_p12 = pnand %p1359_p9, %p841_p11  ;;  %p909_p13 = scmp.ne.s32.totalorder %s1353_s2, %s908_s23 }
  0x17   : > { %p915_p3 = scmp.lt.u32.totalorder %s908_s23, %s1353_s2 }
  0x18   : > { %p1184_p0 = pneg %p1168_p12 }
  0x1a   : > { %p911_p1 = pnand %p1184_p0, %p909_p13 }
  0x1c   : > { %p912_p2 = pneg %p911_p1 }
  0x1e   : > { %p917_p4 = pnand %p915_p3, %p912_p2 }
  0x20   : > { %920 = shalt.err (!%p917_p4)
}
  0x21   : > { %s921_s19 = scalar_lea.vmem %s230_s15, 16  ;;  %s928_s21 = scalar_lea.vmem %s230_s15, 32 }
  0x22   : > { %p922_p7 = scmp.ne.s32.totalorder %s230_s15, %s921_s19  ;;  %p929_p9 = scmp.lt.s32.totalorder %s230_s15, %s230_s15 }
  0x23   : > { %p930_p6 = scmp.lt.s32.totalorder %s928_s21, %s921_s19 }
  0x24   : > { %p924_p8 = pnand %p922_p7, %p1184_p0 }
  0x25   : > { %p931_p5 = por %p930_p6, %p929_p9 }
  0x26   : > { %p925_p11 = pneg %p924_p8 }
  0x28   : > { %p932_p10 = pnand %p931_p5, %p925_p11 }
  0x2a   : > { %935 = shalt.err (!%p932_p10)
}
  0x2b   : > { %847 = dma.hbm_to_vmem [thread:$0]  (!%p1168_p12), %s1353_s2, 16, %s230_s15, [#allocation6]  }
  0x2c   : > { %s936_s14 = scalar_lea.hbm %s1352_s1, 128 }
  0x2d   : > { %p937_p13 = scmp.ne.s32.totalorder %s1352_s1, %s936_s14  ;;  %p943_p5 = scmp.lt.u32.totalorder %s936_s14, %s1352_s1 }
  0x2f   : > { %p939_p1 = pnand %p937_p13, %p1184_p0 }
  0x31   : > { %p940_p6 = pneg %p939_p1 }
  0x33   : > { %p945_p9 = pnand %p943_p5, %p940_p6 }
  0x35   : > { %948 = shalt.err (!%p945_p9)
}
  0x36   : > { %s949_s15 = scalar_lea.vmem %s1172_s17, 128  ;;  %p957_p4 = scmp.lt.s32.totalorder %s1172_s17, %s1172_s17 }
  0x37   : > { %p950_p10 = scmp.ne.s32.totalorder %s1172_s17, %s949_s15  ;;  %p958_p7 = scmp.lt.s32.totalorder %s949_s15, %s949_s15 }
  0x39   : > { %p952_p2 = pnand %p950_p10, %p1184_p0  ;;  %p959_p8 = por %p958_p7, %p957_p4 }
  0x3b   : > { %p953_p3 = pneg %p952_p2 }
  0x3d   : > { %p960_p11 = pnand %p959_p8, %p953_p3 }
  0x3f   : > { %963 = shalt.err (!%p960_p11)
}
  0x40   : > { %844 = dma.hbm_to_vmem [thread:$0]  (!%p1168_p12), %s1352_s1, 128, %s1172_s17, [#allocation3]  }
  0x41   : > { %s964_s8 = scalar_lea.hbm %s1355_s4, 16 }
  0x42   : > { %p965_p13 = scmp.ne.s32.totalorder %s1355_s4, %s964_s8  ;;  %p971_p5 = scmp.lt.u32.totalorder %s964_s8, %s1355_s4 }
  0x44   : > { %p967_p1 = pnand %p965_p13, %p1184_p0 }
  0x46   : > { %p968_p6 = pneg %p967_p1 }
  0x48   : > { %p973_p9 = pnand %p971_p5, %p968_p6 }
  0x4a   : > { %976 = shalt.err (!%p973_p9)
}
  0x4b   : > { %s977_s17 = scalar_lea.vmem %s1174_s20, 16  ;;  %s984_s15 = scalar_lea.vmem %s1174_s20, 32 }
  0x4c   : > { %p978_p10 = scmp.ne.s32.totalorder %s1174_s20, %s977_s17  ;;  %p985_p4 = scmp.lt.s32.totalorder %s1174_s20, %s1174_s20 }
  0x4d   : > { %p986_p7 = scmp.lt.s32.totalorder %s984_s15, %s977_s17 }
  0x4e   : > { %p980_p2 = pnand %p978_p10, %p1184_p0 }
  0x4f   : > { %p987_p8 = por %p986_p7, %p985_p4 }
  0x50   : > { %p981_p3 = pneg %p980_p2 }
  0x52   : > { %p988_p11 = pnand %p987_p8, %p981_p3 }
  0x54   : > { %991 = shalt.err (!%p988_p11)
}
  0x55   : > { %850 = dma.hbm_to_vmem [thread:$0]  (!%p1168_p12), %s1355_s4, 16, %s1174_s20, [#allocation6]  }
  0x56   : > { %p1367_p13 = scmp.ne.s32.totalorder %s1364_s13, 0 }
  0x57   : > { %p1368_p0 = scmp.eq.s32.totalorder (!%p1367_p13), %s1132_s28, 0 }
  0x58   : > { %279 = sbr.rel (%p1367_p13) target bundleno = 821 (0x335), region = 48 }
  0x5f   : > { %1037 = dma.done.wait (%p1368_p0), [#allocation3], 128   ;;  %p1369_p1 = pmov %p1368_p0 }
  0x60   : > { %p1370_p6 = pmov %p1368_p0 }
  0x61   : > { %1039 = vsyncadd (%p1369_p1), [#allocation3], 4294967168 }
  0x62   : > { %1041 = dma.done.wait (%p1370_p6), [#allocation6], 32   ;;  %p1371_p5 = pmov %p1368_p0 }
  0x63   : > { %s1258_s18 = sshll.u32 %s1132_s28, 1  ;;  %vm360_vm0 = vcmask 1046528   ;;  %vm353_vm1 = vcmask 56320   ;;  %v345_v0 = vld [vmem:[#allocation2] sm:$0x7f]  ;;  %v448_v4 = vld [vmem:[%s1354_s3 + $0x8] sm:$0xff]  ;;  %v552_v39 = vlaneseq }
  0x64   : > { %1043 = vsyncadd (%p1371_p5), [#allocation6], 4294967264  ;;  %p328_p12 = scmp.lt.s32.totalorder %s1258_s18, 2  ;;  %808 = vmatprep.subr.msk.mxu1 %vm360_vm0, %v345_v0  ;;  %v447_v3 = vld [vmem:[%s1354_s3] sm:$0xff]  ;;  %v778_v6 = vld [vmem:[#allocation5] ss:$0 sm:$0xff] }
  0x65   : > { %809 = vmatpush3.msk.msra.mxu1 %vm360_vm0, %v345_v0  ;;  %v820_v5 = vpack.c.bf16 %v448_v4, %v447_v3  ;;  %vm456_vm2 = vcmask 130048   ;;  %v547_v19 = vld [vmem:[%s1356_s5 + $0x8] sm:$0xff]  ;;  %v549_v20 = vld [vmem:[%s1356_s5 + $0x18] sm:$0xff]  ;;  %v546_v22 = vld [vmem:[%s1356_s5] sm:$0xff]  ;;  %v1067_v25 = vmov 0.0   ;;  %s320_s29 = sand.u32 1, %s1054_s25  }
  0x66   : > { %s329_s13 = scalar_select %p328_p12, %s1258_s18, 2  ;;  %v824_v21 = vpack.c.bf16 %v549_v20, %v547_v19  ;;  %v548_v23 = vld [vmem:[%s1356_s5 + $0x10] sm:$0xff]  ;;  %632 = vmatprep.mubr.f32.mxu0 %v1067_v25  ;;  %v782_v26 = vld [vmem:[#allocation7] ss:$0 sm:$0xff]  ;;  %v553_v40 = vshrl.u32 %v552_v39, 7  ;;  %vm646_vm3 = vcmask 785408  }
  0x67   : > { %821 = vmatprep.subr.bf16.mxu1 %v820_v5  ;;  %v826_v24 = vpack.c.bf16 %v548_v23, %v546_v22  ;;  %v550_v42 = vld [vmem:[%s1357_s6] sm:$0x3]  ;;  %s775_s14 = sshll.u32 %s320_s29, 5  ;;  %s1291_s19 = scalar_lea.sflag [#allocation4], %s320_s29 }
  0x68   : > { %s777_s20 = sshll.u32 %s329_s13, 3  ;;  %825 = vmatprep.subr.bf16.mxu0 %v824_v21  ;;  %v554_v41 = vsub.s32 0, %v553_v40  ;;  %v558_v43 = vsub.s32 1, %v553_v40  ;;  %s322_s16 = scalar_lea.vmem [#allocation8], %s775_s14 }
  0x69   : > { %s331_s23 = scalar_lea.vmem %s1351_s0, %s777_s20  ;;  %827 = vmatpush1.bf16.msra.mxu0 %v826_v24  ;;  %p1372_p9 = scmp.ne.s32.totalorder %s1362_s11, 0 }
  0x6a   : > { %v343_v1 = vld [vmem:[%s331_s23] sm:$0xff]  ;;  %v344_v2 = vld [vmem:[%s331_s23 + $0x8] sm:$0xff]  ;;  %v555_v44 = vrot.slane %v550_v42, %v554_v41  ;;  %v559_v45 = vrot.slane %v550_v42, %v558_v43  ;;  %s659_s21 = ssub.s32 (%p1372_p9), 3, %s1258_s18 }
  0x6b   : > { %810 = vmatprep.mubr.msk.f32.mxu1 %vm353_vm1, %v343_v1  ;;  %p660_p10 = scmp.lt.s32.totalorder (%p1372_p9), %s659_s21, 2 }
  0x6c   : > { %811 = vmatmul.mubr.msk.f32.vlgmr.msra.gmra.mrb[0].mxu1 %vm353_vm1, %v344_v2 }
  0x6d   : > { %823 = vmatpush3.bf16.msra.mxu1 %v820_v5 }
 0x13f   : > { %v812_v7 = vpop.f32.mrb[0].mxu1 }
 0x140   : > { %v436_v8 = vadd.f32 %v812_v7, %v778_v6  ;;  %v430_v9 = vpop.f32.mrb[1].mxu1 }
 0x141   : > { %v431_v10 = vadd.f32 %v778_v6, %v430_v9 }
 0x142   : > { %v440_v11 = vand.u32 2147483647, %v436_v8 }
 0x143   : > { %v439_v12 = vand.u32 2147483647, %v431_v10 }
 0x144   : > { %v442_v13 = vadd.f32 1.0, %v440_v11 }
 0x145   : > { %v441_v14 = vadd.f32 1.0, %v439_v12 }
 0x146   : > { %900 = vrcp.f32 %v442_v13 }
 0x147   : > { %902 = vrcp.f32 %v441_v14 }
 0x150   : > { %v901_v15 = vpop.eup %900 }
 0x151   : > { %v903_v16 = vpop.eup %902  ;;  %v446_v18 = vmul.f32 %v901_v15, %v436_v8 }
 0x152   : > { %v445_v17 = vmul.f32 %v903_v16, %v431_v10 }
 0x154   : > { %817 = vmatprep.mubr.msk.f32.mxu1 %vm456_vm2, %v445_v17 }
 0x155   : > { %818 = vmatmul.mubr.msk.f32.vlgmr.msra.gmra.mrb[2].mxu1 %vm456_vm2, %v446_v18 }
 0x228   : > { %v819_v27 = vpop.f32.mrb[2].mxu1 }
 0x229   : > { %v535_v28 = vadd.f32 %v819_v27, %v782_v26  ;;  %v529_v29 = vpop.f32.mrb[3].mxu1 }
 0x22a   : > { %v530_v30 = vadd.f32 %v782_v26, %v529_v29 }
 0x22b   : > { %v539_v31 = vand.u32 2147483647, %v535_v28 }
 0x22c   : > { %v538_v32 = vand.u32 2147483647, %v530_v30 }
 0x22d   : > { %v541_v33 = vadd.f32 1.0, %v539_v31 }
 0x22e   : > { %v540_v34 = vadd.f32 1.0, %v538_v32 }
 0x230   : > { %904 = vrcp.f32 %v540_v34 }
 0x231   : > { %906 = vrcp.f32 %v541_v33 }
 0x23a   : > { %v905_v35 = vpop.eup %904 }
 0x23b   : > { %v544_v36 = vmul.f32 %v905_v35, %v530_v30  ;;  %v907_v37 = vpop.eup %906 }
 0x23c   : > { %v545_v38 = vmul.f32 %v907_v37, %v535_v28 }
 0x23d   : > { %785 = vmatmul.mubr.msk.f32.vlgmr.msra.gmra.mrb[0].mxu0 %vm456_vm2, %v544_v36 }
 0x23e   : > { %638 = vmatprep.mubr.f32.mxu0 %v1067_v25 }
 0x241   : > { %786 = vmatmul.mubr.msk.f32.gmra.mrb[2].mxu0 %vm456_vm2, %v545_v38 }
 0x310   : > { %v634_v46 = vpop.f32.mrb[0].mxu0 }
 0x311   : > { %v635_v47 = vadd.f32 %v634_v46, %v555_v44  ;;  %v636_v48 = vpop.f32.mrb[1].mxu0 }
 0x312   : > { %v637_v49 = vadd.f32 %v636_v48, %v559_v45  ;;  %657 = sbr.rel (!%p1372_p9) target bundleno = 821 (0x335), region = 64 }
 0x313   : > { %645 = vst [vmem:[%s322_s16] sm:$0xff] %v635_v47 }
 0x314   : > { %647 = vst.msk [vmem:[%s322_s16 + $0x8] sm:$0xff] %vm646_vm3, %v637_v49  ;;  %v640_v50 = vpop.f32.mrb[2].mxu0 }
 0x315   : > { %v641_v51 = vadd.f32 %v640_v50, %v555_v44  ;;  %v642_v52 = vpop.f32.mrb[3].mxu0 }
 0x316   : > { %v643_v53 = vadd.f32 %v642_v52, %v559_v45 }
 0x317   : > { %648 = vst [vmem:[%s322_s16 + $0x10] sm:$0xff] %v641_v51 }
 0x318   : > { %649 = vst.msk [vmem:[%s322_s16 + $0x18] sm:$0xff] %vm646_vm3, %v643_v53 }
 0x319   : > { %s1380_s21 = smov (!%p660_p10, %s659_s21), 2 }
 0x31a   : > { %s1296_s17 = sshll.u32 %s1380_s21, 8 }
 0x31b   : > { %s665_s15 = ssub.s32 512, %s1296_s17 }
 0x31c   : > { %666 = vsyncadd %s1291_s19, %s665_s15  ;;  %p791_p2 = scmp.ne.s32.totalorder %s1296_s17, 0  ;;  %s800_s10 = sshll.u32 %s1132_s28, 9 }
 0x31d   : > { %s1305_s11 = scalar_lea.hbm %s1358_s7, %s800_s10  ;;  %s672_s20 = sshll.u32 %s322_s16, 4  ;;  %s1307_s20 = int_to_ptr.vmem [resolvable:$true] %s672_s20 }
 0x31e   : > { %s992_s18 = scalar_lea.vmem %s1307_s20, %s1296_s17  ;;  %s1068_s9 = smov [#allocation8]  }
 0x31f   : > { %p993_p3 = scmp.ne.s32.totalorder %s1307_s20, %s992_s18  ;;  %s996_s29 = sshll.u32 %s1068_s9, 4  ;;  %s997_s29 = int_to_ptr.vmem [resolvable:$false] %s996_s29 }
 0x320   : > { %s998_s28 = scalar_lea.vmem %s997_s29, 1024  ;;  %p999_p8 = scmp.lt.s32.totalorder %s1307_s20, %s997_s29 }
 0x321   : > { %p994_p4 = pnand %p993_p3, %p791_p2  ;;  %p1000_p11 = scmp.lt.s32.totalorder %s998_s28, %s992_s18 }
 0x323   : > { %p995_p7 = pneg %p994_p4  ;;  %p1001_p13 = por %p1000_p11, %p999_p8 }
 0x325   : > { %p1002_p0 = pnand %p1001_p13, %p995_p7 }
 0x327   : > { %1005 = shalt.err (!%p1002_p0)
}
 0x328   : > { %s1006_s23 = scalar_lea.hbm %s1305_s11, %s1296_s17  ;;  %s1010_s16 = scalar_lea.hbm %s1358_s7, 768 }
 0x329   : > { %p1007_p1 = scmp.ne.s32.totalorder %s1305_s11, %s1006_s23  ;;  %p1011_p12 = scmp.lt.u32.totalorder %s1305_s11, %s1358_s7 }
 0x32a   : > { %p1012_p9 = scmp.lt.u32.totalorder %s1010_s16, %s1006_s23  ;;  %p1014_p3 = scmp.lt.u32.totalorder %s1006_s23, %s1305_s11 }
 0x32b   : > { %p1008_p6 = pnand %p1007_p1, %p791_p2 }
 0x32c   : > { %p1013_p10 = por %p1012_p9, %p1011_p12 }
 0x32d   : > { %p1009_p5 = pneg %p1008_p6 }
 0x32e   : > { %p1015_p4 = por %p1014_p3, %p1013_p10 }
 0x330   : > { %p1016_p7 = pnand %p1015_p4, %p1009_p5 }
 0x332   : > { %1019 = shalt.err (!%p1016_p7)
}
 0x333   : > { %s1069_s10 = smov 256   ;;  %s1070_s22 = smov 16  }
 0x334   : > { %678 = dma.vmem_to_hbm [thread:$0]  (%p791_p2), %s1307_s20, %s1296_s17, %s1305_s11, %s1291_s19, %s1069_s10, %s1069_s10, %s1070_s22  }
 0x335 PF: > { %p861_p8 = scmp.ge.s32.totalorder %s1062_s27, 2  ;;  %s687_s13 = sand.u32 1, %s1050_s24  }
 0x336   : > { %p1373_p11 = scmp.ne.s32.totalorder %s1363_s12, 0  ;;  %s688_s18 = scalar_lea.sflag [#allocation4], %s687_s13 }
 0x338   : > { %p852_p13 = pnand %p861_p8, %p1373_p11 }
 0x33a   : > { %1045 = dma.done.wait (!%p852_p13), %s688_s18, 512  }
 0x33b   : > { %1047 = vsyncadd (!%p852_p13), %s688_s18, 4294966784  ;;  %s1374_s9 = sld [smem:[#allocation12_spill]]  ;;  %p19_p0 = scmp.ge.s32.totalorder %s1136_s30, 4  }
 0x33c   : > { %s1375_s24 = smov %s1054_s25  ;;  %s1376_s25 = smov %s1058_s26 }
 0x33d   : > { %s1378_s27 = smov %s1136_s30  ;;  %21 = sbr.rel (!%p19_p0) target bundleno = 5 (0x5), region = 96 }
 0x341   : > { %s1377_s26 = smov %s1374_s9 }
 0x344   :  { %693 = vsyncpa [#allocation3], 1 }
 0x345   :  { %695 = vsyncpa [#allocation3 + $0x1], 1 }
 0x346   :  { %696 = vsyncpa [#allocation6], 1 }
 0x347   :  { %697 = vsyncpa [#allocation4], 1 }
 0x348   :  { %699 = vsyncpa [#allocation4 + $0x1], 1 }

</bundles_post_ra>
